<compile_context>
chip_gen: v7x
topology: tpu7x:2x2x1
jax: 0.10.0
libtpu: 0.0.40
codegen_flags: <defaults>
</compile_context>

<pallas_src>
import jax
import jax.numpy as jnp
from jax.experimental import pallas as pl
from jax.experimental.pallas import tpu as pltpu


def _flow_predictor_kernel(x_ref,
                           w1_ref, b1_ref,
                           w2_ref, b2_ref,
                           w3_ref,
                           o_ref):
    """Fused: relu(W1' @ x + b1) -> relu(W2' @ h + b2) -> W3 @ h.

    Layout: channels on sublanes, points on lanes.
      x_ref : [1, C_in, tn]            (f32 or bf16)
      wK_ref: [c_out_k, c_in_k]        (BN scale pre-folded into W1', W2')
      bK_ref: [c_out_k, 1]             (always f32)
      o_ref : [1, 3, tn]               (f32)
    """
    x = x_ref[0]                                               # [C_in, tn]

    # layer 1: folded conv1x1+BN (matmul, f32 accumulate) + bias + ReLU
    h = jnp.dot(w1_ref[...], x, preferred_element_type=jnp.float32)
    h = jnp.maximum(h + b1_ref[...], 0.0)                      # [c1, tn] f32
    h = h.astype(w2_ref.dtype)                                 # bf16 carry if enabled

    # layer 2: folded conv1x1+BN (matmul, f32 accumulate) + bias + ReLU
    h = jnp.dot(w2_ref[...], h, preferred_element_type=jnp.float32)
    h = jnp.maximum(h + b2_ref[...], 0.0)                      # [c2, tn] f32
    h = h.astype(w3_ref.dtype)

    # final conv1x1 to 3 channels (no bias / BN / activation)
    o_ref[0] = jnp.dot(w3_ref[...], h,
                       preferred_element_type=jnp.float32).astype(o_ref.dtype)


def _pick_point_tile(B, N, tile_n):
    """Choose the per-step tile along the point axis.

    Rules:
      * tn must be a multiple of 128 or equal to N (Pallas (8,128) constraint).
      * Tile N as evenly as possible so the last step isn't nearly empty.
      * Ensure >= 2 grid blocks when possible so v7x's two TensorCores both
        get work (harmless on single-TC v5e/v6e).
    """
    if N % 128 != 0 or N <= 128:
        # Can't split cleanly on 128 boundaries -> one full-extent tile.
        return N

    n_tiles = pl.cdiv(N, tile_n)
    tn = 128 * pl.cdiv(pl.cdiv(N, n_tiles), 128)   # even, 128-aligned, <= tile_n
    tn = min(tn, N)

    # Dual-TensorCore guard (v7x): make sure the grid has >= 2 blocks.
    while B * pl.cdiv(N, tn) < 2 and tn > 128 and tn % 256 == 0:
        tn //= 2
    return tn


def flow_predictor_forward(feat, params, *, tile_n=32768, use_bf16=False):
    """feat: [B, C_in, N] float32 -> [B, 3, N] float32.

    use_bf16=True runs the matmuls / inter-layer activations in bf16
    (f32 accumulation); output deviates from the f32 reference (~1e-2).
    """
    B, C_in, N = feat.shape

    (w1, g1, be1, rm1, rv1,
     w2, g2, be2, rm2, rv2,
     w3) = params
    eps = 1e-5

    # Fold eval-mode BatchNorm into per-channel scale/shift, then fold the
    # scale into the conv weights (tiny glue arrays; plain JAX).
    s1 = g1 / jnp.sqrt(rv1 + eps)
    b1 = be1 - rm1 * s1
    s2 = g2 / jnp.sqrt(rv2 + eps)
    b2 = be2 - rm2 * s2

    # Weights stored as [in, out]; transpose to [out, in] for W @ x
    # (points-on-lanes) and fold the BN scale into the output-channel rows.
    w1t = (w1 * s1[None, :]).T          # [c1, C_in]
    w2t = (w2 * s2[None, :]).T          # [c2, c1]
    w3t = w3.T                          # [3,  c2]

    mm_dtype = jnp.bfloat16 if use_bf16 else jnp.float32
    feat_mm = feat.astype(mm_dtype)
    w1t = w1t.astype(mm_dtype)
    w2t = w2t.astype(mm_dtype)
    w3t = w3t.astype(mm_dtype)

    c1 = w1t.shape[0]
    c2 = w2t.shape[0]
    c_out = w3t.shape[0]

    tn = _pick_point_tile(B, N, tile_n)
    grid = (B, pl.cdiv(N, tn))

    # Explicit scoped-VMEM budget: double-buffered in/out blocks + the two
    # [c, tn] f32 layer intermediates + weights, with 2x headroom.  Capped
    # well under v7x's 64 MiB physical VMEM.
    in_bytes = 2 if use_bf16 else 4
    per_block = (2 * C_in * tn * in_bytes          # input blocks (x2 buffers)
                 + 2 * 8 * tn * 4                  # output blocks (sublane-padded)
                 + 2 * max(c1, c2) * tn * 4        # layer intermediates
                 + (1 << 20))                      # weights/biases + slack
    vmem_limit = min(2 * per_block, 48 << 20)

    cost = pl.CostEstimate(
        flops=2 * B * N * (C_in * c1 + c1 * c2 + c2 * c_out),
        transcendentals=0,
        bytes_accessed=B * N * (C_in * in_bytes + c_out * 4),
    )

    full = lambda *shape: pl.BlockSpec(shape, lambda b, j: tuple(0 for _ in shape))

    out = pl.pallas_call(
        _flow_predictor_kernel,
        out_shape=jax.ShapeDtypeStruct((B, c_out, N), jnp.float32),
        grid=grid,
        in_specs=[
            pl.BlockSpec((1, C_in, tn), lambda b, j: (b, 0, j)),  # x tile
            full(c1, C_in),                                       # W1' (BN-folded)
            full(c1, 1),                                          # bias1 (f32)
            full(c2, c1),                                         # W2' (BN-folded)
            full(c2, 1),                                          # bias2 (f32)
            full(c_out, c2),                                      # W3
        ],
        out_specs=pl.BlockSpec((1, c_out, tn), lambda b, j: (b, 0, j)),
        compiler_params=pltpu.CompilerParams(
            dimension_semantics=("parallel", "parallel"),
            vmem_limit_bytes=int(vmem_limit)),
        cost_estimate=cost,
    )(feat_mm, w1t, b1.reshape(c1, 1), w2t, b2.reshape(c2, 1), w3t)

    return out  # already [B, 3, N]


def init_params(key, in_channel, mlp):
    """Deterministic synthetic parameters matching FlowPredictor.__init__."""
    keys = jax.random.split(key, 16)
    ki = iter(keys)

    params = []
    last = in_channel
    for out_ch in mlp:
        # Conv2d weight [out, in, 1, 1] -> stored transposed as [in, out].
        w = 0.1 * jax.random.normal(next(ki), (last, out_ch), jnp.float32)
        gamma = 1.0 + 0.05 * jax.random.normal(next(ki), (out_ch,), jnp.float32)
        beta = 0.05 * jax.random.normal(next(ki), (out_ch,), jnp.float32)
        running_mean = 0.1 * jax.random.normal(next(ki), (out_ch,), jnp.float32)
        running_var = jnp.abs(
            1.0 + 0.1 * jax.random.normal(next(ki), (out_ch,), jnp.float32))
        params += [w, gamma, beta, running_mean, running_var]
        last = out_ch

    # final conv to 3 channels
    w3 = 0.1 * jax.random.normal(next(ki), (last, 3), jnp.float32)
    params.append(w3)
    return tuple(params)


def reference_forward(feat, params):
    """Pure-JAX reference mirroring the PyTorch module (eval-mode BN)."""
    (w1, g1, be1, rm1, rv1, w2, g2, be2, rm2, rv2, w3) = params
    eps = 1e-5
    x = jnp.transpose(feat, (0, 2, 1))                       # [B, N, C]
    h = x @ w1
    h = (h - rm1) / jnp.sqrt(rv1 + eps) * g1 + be1
    h = jnp.maximum(h, 0.0)
    h = h @ w2
    h = (h - rm2) / jnp.sqrt(rv2 + eps) * g2 + be2
    h = jnp.maximum(h, 0.0)
    o = h @ w3                                               # [B, N, 3]
    return jnp.transpose(o, (0, 2, 1))                       # [B, 3, N]


if __name__ == "__main__":
    key = jax.random.PRNGKey(0)
    k_feat, k_params, k_feat2 = jax.random.split(key, 3)

    # Case 1: small, non-128-aligned N (full-extent tile path).
    B, in_channel, N = 2, 4, 16
    mlp = [32, 32]
    feat = jax.random.normal(k_feat, (B, in_channel, N), jnp.float32)
    params = init_params(k_params, in_channel, mlp)

    out = jax.block_until_ready(flow_predictor_forward(feat, params))
    ref = reference_forward(feat, params)
    assert out.shape == (B, 3, N), out.shape
    assert jnp.allclose(out, ref, atol=1e-4, rtol=1e-4), "mismatch vs reference (case 1)"

    # Case 2: 128-aligned N with B=1 -> exercises the even-tiling + dual-TC
    # split path (grid gets >= 2 point tiles).
    feat2 = jax.random.normal(k_feat2, (1, in_channel, 256), jnp.float32)
    out2 = jax.block_until_ready(flow_predictor_forward(feat2, params))
    ref2 = reference_forward(feat2, params)
    assert out2.shape == (1, 3, 256), out2.shape
    assert jnp.allclose(out2, ref2, atol=1e-4, rtol=1e-4), "mismatch vs reference (case 2)"

    print("KERNEL_OK")
</pallas_src>

<mosaic_0001>
module attributes {stable_mosaic.version = 11 : i64} {
  func.func @_flow_predictor_kernel(%arg0: i32, %arg1: i32, %arg2: memref<1x4x16xf32, #tpu.memory_space<vmem>>, %arg3: memref<32x4xf32, #tpu.memory_space<vmem>>, %arg4: memref<32x1xf32, #tpu.memory_space<vmem>>, %arg5: memref<32x32xf32, #tpu.memory_space<vmem>>, %arg6: memref<32x1xf32, #tpu.memory_space<vmem>>, %arg7: memref<3x32xf32, #tpu.memory_space<vmem>>, %arg8: memref<1x3x16xf32, #tpu.memory_space<vmem>>) attributes {dimension_semantics = [#tpu.dimension_semantics<parallel>, #tpu.dimension_semantics<parallel>], iteration_bounds = array<i64: 2, 1>, scalar_prefetch = 0 : i64, scratch_operands = 0 : i64, tpu.core_type = #tpu.core_type<tc>, window_params = [{transform_indices = @transform_0, window_bounds = array<i64: 1, 4, 16>}, {pipeline_mode = #tpu.pipeline_mode<synchronous>, transform_indices = @transform_1, window_bounds = array<i64: 32, 4>}, {pipeline_mode = #tpu.pipeline_mode<synchronous>, transform_indices = @transform_2, window_bounds = array<i64: 32, 1>}, {pipeline_mode = #tpu.pipeline_mode<synchronous>, transform_indices = @transform_3, window_bounds = array<i64: 32, 32>}, {pipeline_mode = #tpu.pipeline_mode<synchronous>, transform_indices = @transform_4, window_bounds = array<i64: 32, 1>}, {pipeline_mode = #tpu.pipeline_mode<synchronous>, transform_indices = @transform_5, window_bounds = array<i64: 3, 32>}, {transform_indices = @transform_6, window_bounds = array<i64: 1, 3, 16>}]} {
    %c0 = arith.constant 0 : index
    %c0_0 = arith.constant 0 : index
    %c0_1 = arith.constant 0 : index
    %0 = vector.load %arg2[%c0, %c0_0, %c0_1] : memref<1x4x16xf32, #tpu.memory_space<vmem>>, vector<1x4x16xf32>
    %1 = vector.shape_cast %0 : vector<1x4x16xf32> to vector<4x16xf32>
    %c0_2 = arith.constant 0 : index
    %c0_3 = arith.constant 0 : index
    %2 = vector.load %arg3[%c0_2, %c0_3] : memref<32x4xf32, #tpu.memory_space<vmem>>, vector<32x4xf32>
    %cst = arith.constant dense<0.000000e+00> : vector<32x16xf32>
    %3 = tpu.matmul %2, %1, %cst {dimension_numbers = #tpu.dot_dimension_numbers<[1], [0], [0], [1], [0, 0, 1, 1], [], []>} : vector<32x4xf32>, vector<4x16xf32>, vector<32x16xf32> -> vector<32x16xf32>
    %c0_4 = arith.constant 0 : index
    %c0_5 = arith.constant 0 : index
    %4 = vector.load %arg4[%c0_4, %c0_5] : memref<32x1xf32, #tpu.memory_space<vmem>>, vector<32x1xf32>
    %5 = vector.broadcast %4 : vector<32x1xf32> to vector<32x16xf32>
    %6 = arith.addf %3, %5 : vector<32x16xf32>
    %cst_6 = arith.constant 0.000000e+00 : f32
    %7 = vector.broadcast %cst_6 : f32 to vector<32x16xf32>
    %8 = arith.maximumf %6, %7 : vector<32x16xf32>
    %c0_7 = arith.constant 0 : index
    %c0_8 = arith.constant 0 : index
    %9 = vector.load %arg5[%c0_7, %c0_8] : memref<32x32xf32, #tpu.memory_space<vmem>>, vector<32x32xf32>
    %cst_9 = arith.constant dense<0.000000e+00> : vector<32x16xf32>
    %10 = tpu.matmul %9, %8, %cst_9 {dimension_numbers = #tpu.dot_dimension_numbers<[1], [0], [0], [1], [0, 0, 1, 1], [], []>} : vector<32x32xf32>, vector<32x16xf32>, vector<32x16xf32> -> vector<32x16xf32>
    %c0_10 = arith.constant 0 : index
    %c0_11 = arith.constant 0 : index
    %11 = vector.load %arg6[%c0_10, %c0_11] : memref<32x1xf32, #tpu.memory_space<vmem>>, vector<32x1xf32>
    %12 = vector.broadcast %11 : vector<32x1xf32> to vector<32x16xf32>
    %13 = arith.addf %10, %12 : vector<32x16xf32>
    %cst_12 = arith.constant 0.000000e+00 : f32
    %14 = vector.broadcast %cst_12 : f32 to vector<32x16xf32>
    %15 = arith.maximumf %13, %14 : vector<32x16xf32>
    %c0_13 = arith.constant 0 : index
    %c0_14 = arith.constant 0 : index
    %16 = vector.load %arg7[%c0_13, %c0_14] : memref<3x32xf32, #tpu.memory_space<vmem>>, vector<3x32xf32>
    %cst_15 = arith.constant dense<0.000000e+00> : vector<3x16xf32>
    %17 = tpu.matmul %16, %15, %cst_15 {dimension_numbers = #tpu.dot_dimension_numbers<[1], [0], [0], [1], [0, 0, 1, 1], [], []>} : vector<3x32xf32>, vector<32x16xf32>, vector<3x16xf32> -> vector<3x16xf32>
    %c0_16 = arith.constant 0 : index
    %c0_17 = arith.constant 0 : index
    %c0_18 = arith.constant 0 : index
    %18 = vector.load %arg8[%c0_16, %c0_17, %c0_18] : memref<1x3x16xf32, #tpu.memory_space<vmem>>, vector<1x3x16xf32>
    %19 = vector.shape_cast %18 : vector<1x3x16xf32> to vector<3x16xf32>
    %20 = vector.shape_cast %17 : vector<3x16xf32> to vector<1x3x16xf32>
    tpu.vector_store %arg8[%c0_16, %c0_17, %c0_18], %20 {strides = array<i32>} : memref<1x3x16xf32, #tpu.memory_space<vmem>>, vector<1x3x16xf32>,
    return
  }
  func.func @transform_0(%arg0: i32, %arg1: i32) -> (i32, i32, i32) {
    %c0_i32 = arith.constant 0 : i32
    %c0_i32_0 = arith.constant 0 : i32
    return %arg0, %c0_i32, %arg1 : i32, i32, i32
  }
  func.func @transform_1(%arg0: i32, %arg1: i32) -> (i32, i32) {
    %c0_i32 = arith.constant 0 : i32
    %c0_i32_0 = arith.constant 0 : i32
    %c0_i32_1 = arith.constant 0 : i32
    return %c0_i32, %c0_i32_0 : i32, i32
  }
  func.func @transform_2(%arg0: i32, %arg1: i32) -> (i32, i32) {
    %c0_i32 = arith.constant 0 : i32
    %c0_i32_0 = arith.constant 0 : i32
    %c0_i32_1 = arith.constant 0 : i32
    return %c0_i32, %c0_i32_0 : i32, i32
  }
  func.func @transform_3(%arg0: i32, %arg1: i32) -> (i32, i32) {
    %c0_i32 = arith.constant 0 : i32
    %c0_i32_0 = arith.constant 0 : i32
    %c0_i32_1 = arith.constant 0 : i32
    return %c0_i32, %c0_i32_0 : i32, i32
  }
  func.func @transform_4(%arg0: i32, %arg1: i32) -> (i32, i32) {
    %c0_i32 = arith.constant 0 : i32
    %c0_i32_0 = arith.constant 0 : i32
    %c0_i32_1 = arith.constant 0 : i32
    return %c0_i32, %c0_i32_0 : i32, i32
  }
  func.func @transform_5(%arg0: i32, %arg1: i32) -> (i32, i32) {
    %c0_i32 = arith.constant 0 : i32
    %c0_i32_0 = arith.constant 0 : i32
    %c0_i32_1 = arith.constant 0 : i32
    return %c0_i32, %c0_i32_0 : i32, i32
  }
  func.func @transform_6(%arg0: i32, %arg1: i32) -> (i32, i32, i32) {
    %c0_i32 = arith.constant 0 : i32
    %c0_i32_0 = arith.constant 0 : i32
    return %arg0, %c0_i32, %arg1 : i32, i32, i32
  }
}

</mosaic_0001>

<bundles_post_ra>
// kernel: tpu_custom_call.1
= control target key start
LH: loop header
LB: loop body
LE: loop exit
PB: predicated region body
PF: predicated region fallthrough
CT: control target
= control target key end

     0   :  { %s870_s21 = smov 0   ;;  %s872_s22 = smov 0   ;;  %s970_s0 = inlined_call_operand.vmem [shape: f32[2,4,16], index: 0, kind: input, shape index: {}]   ;;  %s971_s1 = inlined_call_operand.vmem [shape: f32[32,4], index: 1, kind: input, shape index: {}]   ;;  %s972_s2 = inlined_call_operand.vmem [shape: f32[32,1], index: 2, kind: input, shape index: {}]   ;;  %s973_s3 = inlined_call_operand.vmem [shape: f32[32,32], index: 3, kind: input, shape index: {}]   ;;  %s974_s4 = inlined_call_operand.vmem [shape: f32[32,1], index: 4, kind: input, shape index: {}]   ;;  %s975_s5 = inlined_call_operand.vmem [shape: f32[3,32], index: 5, kind: input, shape index: {}]   ;;  %s976_s6 = inlined_call_operand.vmem [shape: f32[2,3,16], index: 6, kind: output, shape index: {}]  }
   0x1   :  { %s874_s23 = smov 0  }
   0x2 LB: > { %s28_s24 = sadd.s32 1, %s825_s22  ;;  %p697_p0 = scmp.ge.s32.totalorder %s829_s23, 1  ;;  %s829_s23 = sphi %s874_s23, %s16_s23   ;;  %s825_s22 = sphi %s872_s22, %s978_s22   ;;  %s821_s21 = sphi %s870_s21, %s977_s21  }
   0x3   : > { %p30_p1 = scmp.ge.s32.totalorder %s28_s24, 2  ;;  %p230_p2 = scmp.lt.s32.totalorder %s829_s23, 3 }
   0x5   : > { %s980_s24 = smov (%p30_p1, %s28_s24), 0  ;;  %p231_p3 = pnand %p697_p0, %p230_p2 }
   0x6   : > { %p264_p4 = scmp.lt.s32.totalorder (!%p231_p3), %s821_s21, 1  ;;  %v279_v0 = vld [vmem:[%s971_s1] sm:$0xff] (!%p231_p3)  ;;  %vm307_vm0 = vcmask (!%p231_p3), 31744   ;;  %v285_v2 = vld [vmem:[%s972_s2 + $0x10] sm:$0xff] (!%p231_p3)  ;;  %v831_v3 = vmov (!%p231_p3), 0   ;;  %vm320_vm1 = vcmask (!%p231_p3), 1043456  }
   0x7   : > { %234 = sbr.rel (%p231_p3) target bundleno = 686 (0x2ae), region = 44  ;;  %732 = vmatprep.mubr.msk.f32.mxu0 (!%p231_p3), %vm307_vm0, %v279_v0  ;;  %v283_v1 = vld [vmem:[%s972_s2] sm:$0xff] (!%p231_p3)  ;;  %805 = vset.pattern.permute.xlu0 (!%p231_p3), %v831_v3  ;;  %v284_v4 = vld [vmem:[%s972_s2 + $0x8] sm:$0xff] (!%p231_p3)  ;;  %v286_v5 = vld [vmem:[%s972_s2 + $0x18] sm:$0xff] (!%p231_p3)  ;;  %vm441_vm2 = vcmask (!%p231_p3), 261120   ;;  %v832_v36 = vmov (!%p231_p3), 0.0|0.0  }
   0x8   : > { %806 = vset.pattern.permute.xlu1 (!%p231_p3), %v831_v3  ;;  %289 = vperm.xlu0 (!%p231_p3), %805, %v283_v1   ;;  %v280_v7 = vld [vmem:[%s971_s1 + $0x8] sm:$0xff] (!%p231_p3)  ;;  %v281_v8 = vld [vmem:[%s971_s1 + $0x10] sm:$0xff] (!%p231_p3)  ;;  %v417_v9 = vld [vmem:[%s974_s4] sm:$0xff] (!%p231_p3)  ;;  %vm833_vm3 = vmmov (!%p231_p3), 0   ;;  %v834_v37 = vmov (!%p231_p3), 0.0   ;;  %vm617_vm4 = vcmask (!%p231_p3), 124928  }
   0x9   : > { %299 = vperm.xlu1 (!%p231_p3), %806, %v285_v2   ;;  %v418_v10 = vld [vmem:[%s974_s4 + $0x8] sm:$0xff] (!%p231_p3)  ;;  %v282_v11 = vld [vmem:[%s971_s1 + $0x18] sm:$0xff] (!%p231_p3)  ;;  %v419_v12 = vld [vmem:[%s974_s4 + $0x10] sm:$0xff] (!%p231_p3) }
   0xa   : > { %v420_v13 = vld [vmem:[%s974_s4 + $0x18] sm:$0xff] (!%p231_p3)  ;;  %v413_v14 = vld [vmem:[%s973_s3] sm:$0xff] (!%p231_p3)  ;;  %v414_v33 = vld [vmem:[%s973_s3 + $0x8] sm:$0xff] (!%p231_p3) }
   0xb   : > { %746 = vmatprep.mubr.msk.f32.mxu1 (!%p231_p3), %vm441_vm2, %v413_v14  ;;  %v415_v34 = vld [vmem:[%s973_s3 + $0x10] sm:$0xff] (!%p231_p3)  ;;  %v416_v35 = vld [vmem:[%s973_s3 + $0x18] sm:$0xff] (!%p231_p3)  ;;  %v543_v56 = vld [vmem:[%s975_s5] sm:$0x7] (!%p231_p3) }
   0xc   : > { %294 = vperm.xlu0 (!%p231_p3), %805, %v284_v4  }
   0xd   : > { %304 = vperm.xlu1 (!%p231_p3), %806, %v286_v5  }
   0xe   : > { %s982_s21 = smov (!%p264_p4, %s821_s21), 1 }
   0xf   : > { %s698_s7 = sshll.u32 %s982_s21, 2 }
  0x10   : > { %s270_s12 = scalar_lea.vmem %s970_s0, %s698_s7  ;;  %423 = vperm.xlu0 %805, %v417_v9   ;;  %s277_s26 = scalar_lea.vmem %s976_s6, %s698_s7 }
  0x11   : > { %v278_v6 = vld [vmem:[%s270_s12] sm:$0xf]  ;;  %428 = vperm.xlu1 %806, %v418_v10  }
  0x12   : > { %730 = vmatprep.subr.msk.mxu0 %vm320_vm1, %v278_v6 }
  0x13   : > { %731 = vmatpush3.msk.msra.mxu0 %vm320_vm1, %v278_v6 }
  0x14   : > { %733 = vmatmul.mubr.msk.f32.vlgmr.msra.gmra.mrb[0].mxu0 %vm307_vm0, %v280_v7  ;;  %433 = vperm.xlu0 %805, %v419_v12  }
  0x15   : > { %735 = vmatprep.mubr.msk.f32.mxu0 %vm307_vm0, %v281_v8  ;;  %438 = vperm.xlu1 %806, %v420_v13  }
  0x16   : > { %771 = vmatprep.subr.bf16.mxu0 %v832_v36 }
  0x18   : > { %736 = vmatmul.mubr.msk.f32.gmra.mrb[2].mxu0 %vm307_vm0, %v282_v11 }
  0x19   : > { %760 = vmatprep.mubr.msk.f32.mxu0 %vm833_vm3, %v834_v37 }
  0x87   : > { %v290_v15 = vpop.permute.xlu0 %289 }
  0x88   : > { %v300_v16 = vpop.permute.xlu1 %299 }
  0x8b   : > { %v295_v17 = vpop.permute.xlu0 %294 }
  0x8c   : > { %v305_v23 = vpop.permute.xlu1 %304 }
  0x8f   : > { %v424_v39 = vpop.permute.xlu0 %423 }
  0x90   : > { %v429_v38 = vpop.permute.xlu1 %428 }
  0x93   : > { %v434_v48 = vpop.permute.xlu0 %433 }
  0x94   : > { %v439_v45 = vpop.permute.xlu1 %438 }
  0xe7   : > { %v734_v18 = vpop.f32.mrb[0].mxu0 }
  0xe8   : > { %v396_v19 = vadd.f32 %v734_v18, %v295_v17  ;;  %v390_v20 = vpop.f32.mrb[1].mxu0 }
  0xe9   : > { %v391_v21 = vadd.f32 %v390_v20, %v290_v15 }
  0xea   : > { %v410_v22 = vmax.f32 %v396_v19, 0.0 }
  0xeb   : > { %v409_v24 = vmax.f32 %v391_v21, 0.0  ;;  %v737_v25 = vpop.f32.mrb[2].mxu0 }
  0xec   : > { %v406_v26 = vadd.f32 %v737_v25, %v305_v23  ;;  %v400_v27 = vpop.f32.mrb[3].mxu0 }
  0xed   : > { %v401_v28 = vadd.f32 %v400_v27, %v300_v16  ;;  %v763_v29 = vpack.c.bf16 %v410_v22, %v409_v24 }
  0xee   : > { %v412_v30 = vmax.f32 %v406_v26, 0.0 }
  0xef   : > { %v411_v31 = vmax.f32 %v401_v28, 0.0  ;;  %764 = vmatprep.subr.bf16.mxu1 %v763_v29 }
  0xf0   : > { %766 = vmatpush3.bf16.msra.mxu1 %v763_v29 }
  0xf1   : > { %v767_v32 = vpack.c.bf16 %v412_v30, %v411_v31 }
  0xf3   : > { %768 = vmatprep.subr.bf16.mxu1 %v767_v32 }
  0xf4   : > { %770 = vmatpush3.bf16.msra.mxu1 %v767_v32 }
  0xf7   : > { %747 = vmatmul.mubr.msk.f32.vlgmr.msra.gmra.mrb[0].mxu1 %vm441_vm2, %v414_v33 }
  0xf8   : > { %749 = vmatprep.mubr.msk.f32.mxu1 %vm441_vm2, %v415_v34 }
  0xfb   : > { %750 = vmatmul.mubr.msk.f32.gmra.mrb[2].mxu1 %vm441_vm2, %v416_v35 }
 0x1ca   : > { %v748_v40 = vpop.f32.mrb[0].mxu1 }
 0x1cb   : > { %v526_v41 = vadd.f32 %v748_v40, %v429_v38  ;;  %v520_v42 = vpop.f32.mrb[1].mxu1 }
 0x1cc   : > { %v521_v43 = vadd.f32 %v520_v42, %v424_v39 }
 0x1cd   : > { %v540_v44 = vmax.f32 %v526_v41, 0.0 }
 0x1ce   : > { %v539_v46 = vmax.f32 %v521_v43, 0.0  ;;  %v751_v47 = vpop.f32.mrb[2].mxu1 }
 0x1cf   : > { %v536_v49 = vadd.f32 %v751_v47, %v439_v45  ;;  %v530_v50 = vpop.f32.mrb[3].mxu1 }
 0x1d0   : > { %v772_v51 = vpack.c.bf16 %v540_v44, %v539_v46  ;;  %v531_v52 = vadd.f32 %v530_v50, %v434_v48 }
 0x1d1   : > { %v542_v53 = vmax.f32 %v536_v49, 0.0 }
 0x1d2   : > { %v541_v54 = vmax.f32 %v531_v52, 0.0  ;;  %773 = vmatpush3.bf16.msra.mxu0 %v772_v51 }
 0x1d3   : > { %774 = vmatprep.subr.bf16.mxu0 %v832_v36 }
 0x1d4   : > { %v775_v55 = vpack.c.bf16 %v542_v53, %v541_v54 }
 0x1d6   : > { %776 = vmatpush3.bf16.msra.mxu0 %v775_v55 }
 0x1d9   : > { %761 = vmatmul.mubr.msk.f32.vlgmr.msra.gmra.mrb[4].mxu0 %vm441_vm2, %v543_v56 }
 0x2ac   : > { %v613_v57 = vpop.f32.mrb[4].mxu0 }
 0x2ad   : > { %618 = vst.msk [vmem:[%s277_s26] sm:$0x7] %vm617_vm4, %v613_v57  ;;  %v762_v58 = vpop.f32.mrb[5].mxu0 }
 0x2ae PF: > { %s16_s23 = sadd.s32 1, %s829_s23   ;;  %s977_s21 = smov %s825_s22 }
 0x2af   : > { %p13_p5 = scmp.ge.s32.totalorder %s16_s23, 4   ;;  %s978_s22 = smov %s980_s24 }
 0x2b1   :  { %15 = sbr.rel (!%p13_p5) target bundleno = 2 (0x2), region = 74 }

</bundles_post_ra>
